<compile_context>
chip_gen: v7x
topology: tpu7x:2x2x1
jax: 0.10.0
libtpu: 0.0.40
codegen_flags: <defaults>
</compile_context>

<pallas_src>
import functools

import jax
import jax.numpy as jnp
from jax.experimental import pallas as pl
from jax.experimental.pallas import tpu as pltpu


def _round_up(x, m):
    return ((x + m - 1) // m) * m


def encoder_kernel(x_ref, w1_ref, b1_ref, w2_ref, b2_ref, o_ref):
    # First linear: (TB, D_in_p) @ (D_in_p, H_p) -> f32 accumulate on MXU.
    h = jnp.dot(x_ref[...], w1_ref[...], preferred_element_type=jnp.float32)
    h = h + b1_ref[...]                      # f32 bias add (VPU)
    # Swish activation in f32: x * sigmoid(x)  (VPU mul + EUP sigmoid)
    h = h * jax.nn.sigmoid(h)
    # Dropout (eval mode) -> identity.
    # Second linear: cast activation to bf16 operand, f32 accumulate.
    out = jnp.dot(h.astype(w2_ref.dtype), w2_ref[...],
                  preferred_element_type=jnp.float32)
    out = out + b2_ref[...]
    o_ref[...] = out.astype(o_ref.dtype)     # lane-dense (multiple-of-128) store


@functools.partial(jax.jit, static_argnames=("tile_b", "out_dtype"))
def encoder_forward(x, w1, b1, w2, b2, *, tile_b=256, out_dtype=jnp.float32):
    """x: (B, D_in) f32.  w1: (D_in, H), b1: (H,)|(1,H), w2: (H, D_out), b2: (D_out,)|(1,D_out).

    Weights are stored pre-transposed as (in_features, out_features), so the kernel
    computes x @ W + b (== PyTorch x @ W_pt.T + b).
    """
    B, D_in = x.shape
    H = w1.shape[1]
    D_out = w2.shape[1]

    b1 = b1.reshape(1, H)
    b2 = b2.reshape(1, D_out)

    # ---- Padded (TPU-friendly) sizes -------------------------------------
    D_in_p = _round_up(D_in, 128)
    H_p = _round_up(H, 128)
    D_out_p = _round_up(D_out, 128)

    # Batch tile: multiple of 8 sublanes, no larger than the (8-padded) batch.
    tile_b = max(8, (int(tile_b) // 8) * 8)
    tile_b = min(tile_b, _round_up(B, 8))
    B_p = _round_up(B, tile_b)

    # ---- Zero-pad operands in the wrapper (cheap XLA ops) ----------------
    # Zero pads are semantically inert: padded x cols x zero W1 rows contribute 0,
    # padded H cols have zero bias -> swish(0) = 0 -> zero W2 rows contribute 0,
    # padded output cols / batch rows are sliced off below.
    x_p = jnp.zeros((B_p, D_in_p), jnp.bfloat16).at[:B, :D_in].set(
        x.astype(jnp.bfloat16))
    w1_p = jnp.zeros((D_in_p, H_p), jnp.bfloat16).at[:D_in, :H].set(
        w1.astype(jnp.bfloat16))
    b1_p = jnp.zeros((1, H_p), jnp.float32).at[:, :H].set(b1.astype(jnp.float32))
    w2_p = jnp.zeros((H_p, D_out_p), jnp.bfloat16).at[:H, :D_out].set(
        w2.astype(jnp.bfloat16))
    b2_p = jnp.zeros((1, D_out_p), jnp.float32).at[:, :D_out].set(
        b2.astype(jnp.float32))

    grid = (B_p // tile_b,)

    out_p = pl.pallas_call(
        encoder_kernel,
        out_shape=jax.ShapeDtypeStruct((B_p, D_out_p), out_dtype),
        grid_spec=pltpu.PrefetchScalarGridSpec(
            num_scalar_prefetch=0,
            grid=grid,
            in_specs=[
                pl.BlockSpec((tile_b, D_in_p), lambda i: (i, 0)),   # x tile (pipelined)
                pl.BlockSpec((D_in_p, H_p), lambda i: (0, 0)),      # W1 (resident)
                pl.BlockSpec((1, H_p), lambda i: (0, 0)),           # b1 (resident)
                pl.BlockSpec((H_p, D_out_p), lambda i: (0, 0)),     # W2 (resident)
                pl.BlockSpec((1, D_out_p), lambda i: (0, 0)),       # b2 (resident)
            ],
            out_specs=pl.BlockSpec((tile_b, D_out_p), lambda i: (i, 0)),
        ),
        compiler_params=pltpu.CompilerParams(
            # Batch tiles are independent -> megacore sharding on v7x.
            dimension_semantics=("parallel",),
            # NOTE: if D_in/H grow to realistic sizes, set vmem_limit_bytes here and
            # re-derive tile_b against v7x's 64 MiB VMEM (add a K grid axis +
            # accumulator scratch once W1 no longer fits as a resident block).
        ),
    )(x_p, w1_p, b1_p, w2_p, b2_p)

    # Slice away the batch / lane padding.
    return out_p[:B, :D_out]


def init_params(key, input_dim, hidden_dim, output_dim):
    """Deterministic init mirroring nn.Linear defaults: U(-1/sqrt(fan_in), 1/sqrt(fan_in))."""
    k1, k2, k3, k4 = jax.random.split(key, 4)
    bound1 = 1.0 / jnp.sqrt(input_dim)
    bound2 = 1.0 / jnp.sqrt(hidden_dim)
    # Stored as (in_features, out_features) == PyTorch weight transposed.
    w1 = jax.random.uniform(k1, (input_dim, hidden_dim), jnp.float32, -bound1, bound1)
    b1 = jax.random.uniform(k2, (1, hidden_dim), jnp.float32, -bound1, bound1)
    w2 = jax.random.uniform(k3, (hidden_dim, output_dim), jnp.float32, -bound2, bound2)
    b2 = jax.random.uniform(k4, (1, output_dim), jnp.float32, -bound2, bound2)
    return w1, b1, w2, b2


def reference_forward_f32(x, w1, b1, w2, b2):
    h = x @ w1 + b1
    h = h * jax.nn.sigmoid(h)
    return h @ w2 + b2


def reference_forward_bf16(x, w1, b1, w2, b2):
    """Reference that mirrors the kernel's bf16-operand / f32-accumulate path."""
    h = jnp.dot(x.astype(jnp.bfloat16), w1.astype(jnp.bfloat16),
                preferred_element_type=jnp.float32) + b1
    h = h * jax.nn.sigmoid(h)
    return jnp.dot(h.astype(jnp.bfloat16), w2.astype(jnp.bfloat16),
                   preferred_element_type=jnp.float32) + b2


if __name__ == "__main__":
    # Small shapes consistent with the module: batch=64, input_dim=32, hidden=64, output=16.
    # tile_b=32 -> grid=(2,) so the batch tiling / pipelining path is exercised.
    B, D_IN, H, D_OUT = 64, 32, 64, 16

    key = jax.random.PRNGKey(0)
    k_x, k_p = jax.random.split(key)
    x = jax.random.normal(k_x, (B, D_IN), jnp.float32)
    w1, b1, w2, b2 = init_params(k_p, D_IN, H, D_OUT)

    out = encoder_forward(x, w1, b1, w2, b2, tile_b=32)
    out = jax.block_until_ready(out)
    assert out.shape == (B, D_OUT), out.shape

    # Exact-path reference (same bf16 casts as the kernel) -> tight tolerance.
    ref_bf16 = reference_forward_bf16(x, w1, b1, w2, b2)
    assert jnp.allclose(out, ref_bf16, atol=1e-3, rtol=1e-3), "mismatch vs bf16-path reference"

    # Full-f32 reference -> loose tolerance (bf16 operand rounding only).
    ref_f32 = reference_forward_f32(x, w1, b1, w2, b2)
    assert jnp.allclose(out, ref_f32, atol=5e-2, rtol=5e-2), "mismatch vs f32 reference"

    print("KERNEL_OK")
</pallas_src>

<mosaic_0001>
module attributes {stable_mosaic.version = 11 : i64} {
  func.func @encoder_kernel(%arg0: i32, %arg1: memref<32x128xbf16, #tpu.memory_space<vmem>>, %arg2: memref<128x128xbf16, #tpu.memory_space<vmem>>, %arg3: memref<1x128xf32, #tpu.memory_space<vmem>>, %arg4: memref<128x128xbf16, #tpu.memory_space<vmem>>, %arg5: memref<1x128xf32, #tpu.memory_space<vmem>>, %arg6: memref<32x128xf32, #tpu.memory_space<vmem>>) attributes {dimension_semantics = [#tpu.dimension_semantics<parallel>], iteration_bounds = array<i64: 2>, scalar_prefetch = 0 : i64, scratch_operands = 0 : i64, tpu.core_type = #tpu.core_type<tc>, window_params = [{transform_indices = @transform_0, window_bounds = array<i64: 32, 128>}, {pipeline_mode = #tpu.pipeline_mode<synchronous>, transform_indices = @transform_1, window_bounds = array<i64: 128, 128>}, {pipeline_mode = #tpu.pipeline_mode<synchronous>, transform_indices = @transform_2, window_bounds = array<i64: 1, 128>}, {pipeline_mode = #tpu.pipeline_mode<synchronous>, transform_indices = @transform_3, window_bounds = array<i64: 128, 128>}, {pipeline_mode = #tpu.pipeline_mode<synchronous>, transform_indices = @transform_4, window_bounds = array<i64: 1, 128>}, {transform_indices = @transform_5, window_bounds = array<i64: 32, 128>}]} {
    %c0 = arith.constant 0 : index
    %c0_0 = arith.constant 0 : index
    %0 = vector.load %arg1[%c0, %c0_0] : memref<32x128xbf16, #tpu.memory_space<vmem>>, vector<32x128xbf16>
    %c0_1 = arith.constant 0 : index
    %c0_2 = arith.constant 0 : index
    %1 = vector.load %arg2[%c0_1, %c0_2] : memref<128x128xbf16, #tpu.memory_space<vmem>>, vector<128x128xbf16>
    %cst = arith.constant dense<0.000000e+00> : vector<32x128xf32>
    %2 = tpu.matmul %0, %1, %cst {dimension_numbers = #tpu.dot_dimension_numbers<[1], [0], [0], [1], [0, 0, 1, 1], [], []>} : vector<32x128xbf16>, vector<128x128xbf16>, vector<32x128xf32> -> vector<32x128xf32>
    %c0_3 = arith.constant 0 : index
    %c0_4 = arith.constant 0 : index
    %3 = vector.load %arg3[%c0_3, %c0_4] : memref<1x128xf32, #tpu.memory_space<vmem>>, vector<1x128xf32>
    %4 = vector.broadcast %3 : vector<1x128xf32> to vector<32x128xf32>
    %5 = arith.addf %2, %4 : vector<32x128xf32>
    %6 = arith.negf %5 : vector<32x128xf32>
    %7 = math.exp %6 : vector<32x128xf32>
    %cst_5 = arith.constant 1.000000e+00 : f32
    %8 = vector.broadcast %cst_5 : f32 to vector<32x128xf32>
    %9 = arith.addf %8, %7 : vector<32x128xf32>
    %10 = arith.divf %8, %9 : vector<32x128xf32>
    %11 = arith.mulf %5, %10 : vector<32x128xf32>
    %12 = arith.truncf %11 : vector<32x128xf32> to vector<32x128xbf16>
    %c0_6 = arith.constant 0 : index
    %c0_7 = arith.constant 0 : index
    %13 = vector.load %arg4[%c0_6, %c0_7] : memref<128x128xbf16, #tpu.memory_space<vmem>>, vector<128x128xbf16>
    %cst_8 = arith.constant dense<0.000000e+00> : vector<32x128xf32>
    %14 = tpu.matmul %12, %13, %cst_8 {dimension_numbers = #tpu.dot_dimension_numbers<[1], [0], [0], [1], [0, 0, 1, 1], [], []>} : vector<32x128xbf16>, vector<128x128xbf16>, vector<32x128xf32> -> vector<32x128xf32>
    %c0_9 = arith.constant 0 : index
    %c0_10 = arith.constant 0 : index
    %15 = vector.load %arg5[%c0_9, %c0_10] : memref<1x128xf32, #tpu.memory_space<vmem>>, vector<1x128xf32>
    %16 = vector.broadcast %15 : vector<1x128xf32> to vector<32x128xf32>
    %17 = arith.addf %14, %16 : vector<32x128xf32>
    %c0_11 = arith.constant 0 : index
    %c0_12 = arith.constant 0 : index
    %18 = vector.load %arg6[%c0_11, %c0_12] : memref<32x128xf32, #tpu.memory_space<vmem>>, vector<32x128xf32>
    tpu.vector_store %arg6[%c0_11, %c0_12], %17 {strides = array<i32>} : memref<32x128xf32, #tpu.memory_space<vmem>>, vector<32x128xf32>,
    return
  }
  func.func @transform_0(%arg0: i32) -> (i32, i32) {
    %c0_i32 = arith.constant 0 : i32
    %c0_i32_0 = arith.constant 0 : i32
    return %arg0, %c0_i32 : i32, i32
  }
  func.func @transform_1(%arg0: i32) -> (i32, i32) {
    %c0_i32 = arith.constant 0 : i32
    %c0_i32_0 = arith.constant 0 : i32
    %c0_i32_1 = arith.constant 0 : i32
    return %c0_i32, %c0_i32_0 : i32, i32
  }
  func.func @transform_2(%arg0: i32) -> (i32, i32) {
    %c0_i32 = arith.constant 0 : i32
    %c0_i32_0 = arith.constant 0 : i32
    %c0_i32_1 = arith.constant 0 : i32
    return %c0_i32, %c0_i32_0 : i32, i32
  }
  func.func @transform_3(%arg0: i32) -> (i32, i32) {
    %c0_i32 = arith.constant 0 : i32
    %c0_i32_0 = arith.constant 0 : i32
    %c0_i32_1 = arith.constant 0 : i32
    return %c0_i32, %c0_i32_0 : i32, i32
  }
  func.func @transform_4(%arg0: i32) -> (i32, i32) {
    %c0_i32 = arith.constant 0 : i32
    %c0_i32_0 = arith.constant 0 : i32
    %c0_i32_1 = arith.constant 0 : i32
    return %c0_i32, %c0_i32_0 : i32, i32
  }
  func.func @transform_5(%arg0: i32) -> (i32, i32) {
    %c0_i32 = arith.constant 0 : i32
    %c0_i32_0 = arith.constant 0 : i32
    return %arg0, %c0_i32 : i32, i32
  }
}

</mosaic_0001>

<bundles_post_ra>
// kernel: encoder_forward.1
= control target key start
LH: loop header
LB: loop body
LE: loop exit
PB: predicated region body
PF: predicated region fallthrough
CT: control target
= control target key end

     0   :  { %s750_s18 = smov 0   ;;  %s825_s0 = inlined_call_operand.vmem [shape: bf16[64,128], index: 0, kind: input, shape index: {}]   ;;  %s826_s1 = inlined_call_operand.vmem [shape: bf16[128,128], index: 1, kind: input, shape index: {}]   ;;  %s827_s2 = inlined_call_operand.vmem [shape: f32[1,128], index: 2, kind: input, shape index: {}]   ;;  %s828_s3 = inlined_call_operand.vmem [shape: bf16[128,128], index: 3, kind: input, shape index: {}]   ;;  %s829_s4 = inlined_call_operand.vmem [shape: f32[1,128], index: 4, kind: input, shape index: {}]   ;;  %s830_s5 = inlined_call_operand.vmem [shape: f32[64,128], index: 5, kind: output, shape index: {}]  }
   0x1 LB: > { %s575_s19 = sadd.s32 4294967295, %s718_s18   ;;  %p579_p0 = scmp.ge.s32.totalorder %s718_s18, 1  ;;  %s718_s18 = sphi %s750_s18, %s15_s18  }
   0x2   : > { %p188_p1 = scmp.lt.s32.totalorder %s718_s18, 3 }
   0x4   : > { %p189_p2 = pnand %p579_p0, %p188_p1 }
   0x5   : > { %v678_v0 = vld [vmem:[%s826_s1] sm:$0xff] (!%p189_p2)   ;;  %s580_s22 = sshll.u32 (!%p189_p2), %s575_s19, 2  ;;  %v679_v1 = vld [vmem:[%s826_s1 + $0x8] sm:$0xff] (!%p189_p2)   ;;  %v680_v2 = vld [vmem:[%s826_s1 + $0x10] sm:$0xff] (!%p189_p2)  }
   0x6   : > { %192 = sbr.rel (%p189_p2) target bundleno = 504 (0x1f8), region = 40  ;;  %p217_p3 = scmp.lt.s32.totalorder (!%p189_p2), %s580_s22, 7  ;;  %630 = vmatprep.subr.bf16.mxu0 (!%p189_p2), %v678_v0  ;;  %v681_v3 = vld [vmem:[%s826_s1 + $0x18] sm:$0xff] (!%p189_p2)   ;;  %v682_v5 = vld [vmem:[%s826_s1 + $0x20] sm:$0xff] (!%p189_p2)   ;;  %v683_v6 = vld [vmem:[%s826_s1 + $0x28] sm:$0xff] (!%p189_p2)  }
   0x7   : > { %631 = vmatpush3.bf16.msra.mxu0 (!%p189_p2), %v678_v0  ;;  %v684_v7 = vld [vmem:[%s826_s1 + $0x30] sm:$0xff] (!%p189_p2)   ;;  %v685_v8 = vld [vmem:[%s826_s1 + $0x38] sm:$0xff] (!%p189_p2)   ;;  %v688_v10 = vld [vmem:[%s828_s3] sm:$0xff] (!%p189_p2)  }
   0x8   : > { %632 = vmatprep.subr.bf16.mxu0 (!%p189_p2), %v679_v1  ;;  %650 = vmatprep.subr.bf16.mxu1 (!%p189_p2), %v688_v10  ;;  %v689_v11 = vld [vmem:[%s828_s3 + $0x8] sm:$0xff] (!%p189_p2)   ;;  %v690_v12 = vld [vmem:[%s828_s3 + $0x10] sm:$0xff] (!%p189_p2)   ;;  %v691_v13 = vld [vmem:[%s828_s3 + $0x18] sm:$0xff] (!%p189_p2)  }
   0x9   : > { %651 = vmatpush3.bf16.msra.mxu1 (!%p189_p2), %v688_v10  ;;  %v692_v14 = vld [vmem:[%s828_s3 + $0x20] sm:$0xff] (!%p189_p2)   ;;  %v693_v15 = vld [vmem:[%s828_s3 + $0x28] sm:$0xff] (!%p189_p2)   ;;  %v694_v16 = vld [vmem:[%s828_s3 + $0x30] sm:$0xff] (!%p189_p2)  }
   0xa   : > { %652 = vmatprep.subr.bf16.mxu1 (!%p189_p2), %v689_v11  ;;  %v695_v17 = vld [vmem:[%s828_s3 + $0x38] sm:$0xff] (!%p189_p2)   ;;  %v584_v18 = vld [vmem:[%s827_s2] ss:$0 sm:$0xff] (!%p189_p2) }
   0xb   : > { %633 = vmatpush3.bf16.msra.mxu0 (!%p189_p2), %v679_v1  ;;  %v599_v49 = vld [vmem:[%s829_s4] ss:$0 sm:$0xff] (!%p189_p2) }
   0xc   : > { %634 = vmatprep.subr.bf16.mxu0 (!%p189_p2), %v680_v2 }
   0xd   : > { %s832_s22 = smov (!%p217_p3, %s580_s22), 7  ;;  %653 = vmatpush3.bf16.msra.mxu1 %v689_v11 }
   0xe   : > { %s581_s27 = sshll.u32 %s832_s22, 2  ;;  %654 = vmatprep.subr.bf16.mxu1 %v690_v12  ;;  %s583_s11 = sshll.u32 %s832_s22, 3 }
   0xf   : > { %s220_s30 = scalar_lea.vmem %s825_s0, %s581_s27  ;;  %635 = vmatpush3.bf16.msra.mxu0 %v680_v2  ;;  %s226_s16 = scalar_lea.vmem %s830_s5, %s583_s11 }
  0x10   : > { %v686_v4 = vld [vmem:[%s220_s30] sm:$0xff]   ;;  %636 = vmatprep.subr.bf16.mxu0 %v681_v3  ;;  %v687_v9 = vld [vmem:[%s220_s30 + $0x8] sm:$0xff]  }
  0x11   : > { %646 = vmatprep.mubr.bf16.mxu0 %v686_v4  ;;  %655 = vmatpush3.bf16.msra.mxu1 %v690_v12 }
  0x12   : > { %656 = vmatprep.subr.bf16.mxu1 %v691_v13 }
  0x13   : > { %637 = vmatpush3.bf16.msra.mxu0 %v681_v3 }
  0x14   : > { %638 = vmatprep.subr.bf16.mxu0 %v682_v5 }
  0x15   : > { %657 = vmatpush3.bf16.msra.mxu1 %v691_v13 }
  0x16   : > { %658 = vmatprep.subr.bf16.mxu1 %v692_v14 }
  0x17   : > { %639 = vmatpush3.bf16.msra.mxu0 %v682_v5 }
  0x18   : > { %640 = vmatprep.subr.bf16.mxu0 %v683_v6 }
  0x19   : > { %659 = vmatpush3.bf16.msra.mxu1 %v692_v14 }
  0x1a   : > { %660 = vmatprep.subr.bf16.mxu1 %v693_v15 }
  0x1b   : > { %641 = vmatpush3.bf16.msra.mxu0 %v683_v6 }
  0x1c   : > { %642 = vmatprep.subr.bf16.mxu0 %v684_v7 }
  0x1d   : > { %661 = vmatpush3.bf16.msra.mxu1 %v693_v15 }
  0x1e   : > { %662 = vmatprep.subr.bf16.mxu1 %v694_v16 }
  0x1f   : > { %643 = vmatpush3.bf16.msra.mxu0 %v684_v7 }
  0x20   : > { %644 = vmatprep.subr.bf16.mxu0 %v685_v8 }
  0x21   : > { %663 = vmatpush3.bf16.msra.mxu1 %v694_v16 }
  0x22   : > { %664 = vmatprep.subr.bf16.mxu1 %v695_v17 }
  0x23   : > { %645 = vmatpush3.bf16.msra.mxu0 %v685_v8 }
  0x25   : > { %665 = vmatpush3.bf16.msra.mxu1 %v695_v17 }
  0x26   : > { %647 = vmatmul.mubr.bf16.vlgmr.msra.gmra.mrb[0].mxu0 %v687_v9 }
  0xf9   : > { %v648_v19 = vpop.f32.mrb[0].mxu0 }
  0xfa   : > { %v359_v20 = vadd.f32 %v648_v19, %v584_v18  ;;  %v350_v21 = vpop.f32.mrb[1].mxu0 }
  0xfb   : > { %v351_v22 = vadd.f32 %v584_v18, %v350_v21  ;;  %v649_v23 = vpop.f32.mrb[2].mxu0 }
  0xfc   : > { %v597_v24 = vmul.f32 -1.442695, %v359_v20  ;;  %v362_v25 = vadd.f32 %v649_v23, %v584_v18  ;;  %v353_v26 = vpop.f32.mrb[3].mxu0 }
  0xfd   : > { %v595_v27 = vmul.f32 -1.442695, %v351_v22  ;;  %v354_v28 = vadd.f32 %v584_v18, %v353_v26 }
  0xfe   : > { %696 = vpow2.f32 %v597_v24  ;;  %v598_v29 = vmul.f32 -1.442695, %v362_v25 }
  0xff   : > { %698 = vpow2.f32 %v595_v27  ;;  %v596_v30 = vmul.f32 -1.442695, %v354_v28 }
 0x100   : > { %700 = vpow2.f32 %v598_v29 }
 0x101   : > { %702 = vpow2.f32 %v596_v30 }
 0x108   : > { %v697_v31 = vpop.eup %696 }
 0x109   : > { %v699_v32 = vpop.eup %698  ;;  %v379_v33 = vadd.f32 1.0, %v697_v31 }
 0x10a   : > { %v701_v34 = vpop.eup %700  ;;  %v377_v35 = vadd.f32 1.0, %v699_v32 }
 0x10b   : > { %v703_v36 = vpop.eup %702  ;;  %704 = vrcp.f32 %v379_v33  ;;  %v380_v37 = vadd.f32 1.0, %v701_v34 }
 0x10c   : > { %706 = vrcp.f32 %v377_v35  ;;  %v378_v38 = vadd.f32 1.0, %v703_v36 }
 0x10d   : > { %708 = vrcp.f32 %v380_v37 }
 0x10e   : > { %710 = vrcp.f32 %v378_v38 }
 0x115   : > { %v705_v39 = vpop.eup %704 }
 0x116   : > { %v707_v40 = vpop.eup %706  ;;  %v391_v43 = vmul.f32 %v705_v39, %v359_v20 }
 0x117   : > { %v709_v41 = vpop.eup %708  ;;  %v389_v45 = vmul.f32 %v707_v40, %v351_v22 }
 0x118   : > { %v711_v42 = vpop.eup %710  ;;  %v392_v44 = vmul.f32 %v709_v41, %v362_v25 }
 0x119   : > { %v390_v46 = vmul.f32 %v711_v42, %v354_v28 }
 0x11a   : > { %v394_v47 = vpack.c.bf16 %v392_v44, %v391_v43 }
 0x11b   : > { %v393_v48 = vpack.c.bf16 %v390_v46, %v389_v45 }
 0x11d   : > { %666 = vmatprep.mubr.bf16.mxu1 %v393_v48 }
 0x11e   : > { %667 = vmatmul.mubr.bf16.vlgmr.msra.gmra.mrb[0].mxu1 %v394_v47 }
 0x1f1   : > { %v668_v50 = vpop.f32.mrb[0].mxu1 }
 0x1f2   : > { %v500_v51 = vpop.f32.mrb[1].mxu1  ;;  %v509_v56 = vadd.f32 %v668_v50, %v599_v49 }
 0x1f3   : > { %v501_v52 = vadd.f32 %v599_v49, %v500_v51  ;;  %v669_v53 = vpop.f32.mrb[2].mxu1 }
 0x1f4   : > { %v503_v54 = vpop.f32.mrb[3].mxu1  ;;  %v512_v57 = vadd.f32 %v669_v53, %v599_v49  ;;  %517 = vst [vmem:[%s226_s16 + $0x10] sm:$0xff] %v509_v56 }
 0x1f5   : > { %515 = vst [vmem:[%s226_s16] sm:$0xff] %v501_v52  ;;  %v504_v55 = vadd.f32 %v599_v49, %v503_v54 }
 0x1f6   : > { %518 = vst [vmem:[%s226_s16 + $0x18] sm:$0xff] %v512_v57 }
 0x1f7   : > { %516 = vst [vmem:[%s226_s16 + $0x8] sm:$0xff] %v504_v55 }
 0x1f8 PF: > { %s15_s18 = sadd.s32 1, %s718_s18  }
 0x1f9   : > { %p12_p4 = scmp.ge.s32.totalorder %s15_s18, 4  }
 0x1fb   :  { %14 = sbr.rel (!%p12_p4) target bundleno = 1 (0x1), region = 70 }

</bundles_post_ra>
